<compile_context>
chip_gen: v6e
topology: v6e:2x2x1
jax: 0.10.0
libtpu: 0.0.40
codegen_flags: <defaults>
</compile_context>

<pallas_src>
import functools
from typing import Any, Callable, Dict, Sequence

import jax
import jax.numpy as jnp
from jax.experimental import pallas as pl
from jax.experimental.pallas import tpu as pltpu

LANES = 128
SUBLANES = 8
_COL_CANDIDATES = (4096, 2048, 1024, 512, 256, 128)   # lane-dense widths (x128)
_MAX_BLOCK_BYTES = 4 * 1024 * 1024                    # per-buffer tile cap
_VMEM_LIMIT_BYTES = 32 * 1024 * 1024                  # explicit scoped-VMEM budget


# ---------------------------------------------------------------------------
# Pallas kernel: elementwise affine  y = x * scale + offset
# ---------------------------------------------------------------------------
def _affine_kernel(scale_ref, offset_ref, x_ref, o_ref, *, compute_dtype):
    # scale/offset live in SMEM as f32 scalars; x_ref/o_ref are VMEM tiles in the
    # array's native dtype.  compute_dtype is bf16 on v6e/v7x for bf16 inputs
    # (native bf16 VALU), f32 otherwise (v5e has no bf16 VALU).
    s = scale_ref[0].astype(compute_dtype)
    b = offset_ref[0].astype(compute_dtype)
    y = x_ref[...].astype(compute_dtype) * s + b
    if jnp.issubdtype(o_ref.dtype, jnp.integer):
        y = jnp.round(y)          # avoid truncation for integer labels/masks
    o_ref[...] = y.astype(o_ref.dtype)


@functools.lru_cache(maxsize=None)
def _has_native_bf16_valu() -> bool:
    try:
        kind = jax.devices()[0].device_kind.lower()
    except Exception:  # pragma: no cover - non-TPU fallback
        return False
    return ("v6" in kind) or ("v7" in kind)


def _compute_dtype_for(dtype) -> Any:
    if dtype == jnp.bfloat16 and _has_native_bf16_valu():
        return jnp.bfloat16
    return jnp.float32


def _choose_cols(n: int) -> int:
    """Widest lane-dense width (multiple of 128) dividing n.

    Prefers widths that leave >=32 rows (so the row grid can split into >=4
    blocks of 8 for megacore + pipelining), then >=8 rows, then anything.
    Requires n % 128 == 0 (128 always divides then).
    """
    best_any = None
    best_8 = None
    for c in _COL_CANDIDATES:
        if n % c == 0:
            rows = n // c
            if best_any is None:
                best_any = c
            if best_8 is None and rows >= SUBLANES:
                best_8 = c
            if rows >= 4 * SUBLANES:
                return c
    return best_8 if best_8 is not None else best_any


def _pick_row_block(rows: int, rows_cap: int) -> int:
    """Row block: multiple of 8 (or full extent), <= rows_cap.

    Targets >=4 grid steps (even count) on large slabs and >=2 steps whenever
    rows >= 16, so the 'parallel' grid axis can shard across v7x's two
    TensorCores and DMA pipelining has something to overlap.  Only degenerates
    to grid=(1,) when the slab has <=8 rows.
    """
    if rows <= SUBLANES:
        return rows                              # single tiny full-extent block
    max_steps = pl.cdiv(rows, SUBLANES)          # steps with minimal 8-row blocks
    if max_steps >= 4:
        target = max(4, pl.cdiv(rows, rows_cap))
        if target % 2:
            target += 1                          # avoid 2:1 TC imbalance
    else:
        target = max_steps                       # 2 or 3 steps, still splittable
    blk = pl.cdiv(rows, target)
    blk = ((blk + SUBLANES - 1) // SUBLANES) * SUBLANES
    return max(SUBLANES, min(blk, rows_cap))


def _affine_pallas_2d(x2d: jnp.ndarray, scale_arr: jnp.ndarray,
                      offset_arr: jnp.ndarray, compute_dtype,
                      donate: bool = False) -> jnp.ndarray:
    """Run the affine kernel over a lane-dense [rows, cols] slab (cols % 128 == 0)."""
    rows, cols = x2d.shape
    itemsize = jnp.dtype(x2d.dtype).itemsize

    rows_cap = max(SUBLANES,
                   (_MAX_BLOCK_BYTES // (cols * itemsize)) // SUBLANES * SUBLANES)
    row_block = _pick_row_block(rows, rows_cap)
    grid = (pl.cdiv(rows, row_block),)

    kernel = functools.partial(_affine_kernel, compute_dtype=compute_dtype)
    cost = pl.CostEstimate(flops=2 * rows * cols, transcendentals=0,
                           bytes_accessed=2 * rows * cols * itemsize)

    return pl.pallas_call(
        kernel,
        out_shape=jax.ShapeDtypeStruct((rows, cols), x2d.dtype),
        grid=grid,
        in_specs=[
            pl.BlockSpec(memory_space=pltpu.MemorySpace.SMEM),   # scale
            pl.BlockSpec(memory_space=pltpu.MemorySpace.SMEM),   # offset
            pl.BlockSpec((row_block, cols), lambda i: (i, 0)),
        ],
        out_specs=pl.BlockSpec((row_block, cols), lambda i: (i, 0)),
        compiler_params=pltpu.CompilerParams(
            dimension_semantics=("parallel",),
            vmem_limit_bytes=_VMEM_LIMIT_BYTES,
        ),
        cost_estimate=cost,
        # BaseTransform.forward overwrites data[key], so the source buffer is
        # dead; aliasing (opt-in) keeps HBM footprint flat across dict keys.
        input_output_aliases={2: 0} if donate else {},
    )(scale_arr, offset_arr, x2d)


def affine_augment_fn(x: jnp.ndarray, *, scale=1.0, offset=0.0,
                      donate: bool = False) -> jnp.ndarray:
    """augment_fn: y = x * scale + offset, elementwise, via the Pallas kernel.

    Keeps the input dtype end-to-end (no wrapper upcast); accepts traced
    scale/offset values (no host sync).
    """
    orig_shape = x.shape
    n = int(x.size)
    dtype = x.dtype

    scale_arr = jnp.asarray(scale, dtype=jnp.float32).reshape(1)
    offset_arr = jnp.asarray(offset, dtype=jnp.float32).reshape(1)
    compute_dtype = _compute_dtype_for(dtype)

    if n == 0:
        return x

    xf = x.reshape(-1)
    n_main = (n // LANES) * LANES

    if n_main == 0:
        # Whole array smaller than one vreg row: plain JAX beats a kernel launch.
        y = (xf.astype(jnp.float32) * scale_arr[0] + offset_arr[0]).astype(dtype)
        return y.reshape(orig_shape)

    if n_main == n:
        # Common case: metadata-only reshape to a lane-dense slab, no pad/slice.
        cols = _choose_cols(n)
        y = _affine_pallas_2d(xf.reshape(-1, cols), scale_arr, offset_arr,
                              compute_dtype, donate).reshape(-1)
    else:
        # Ragged fallback: kernel on the 128-divisible prefix; <128-element tail
        # in plain JAX.  Avoids the old pad-concat(input) + slice(output) round
        # trip which cost two extra full HBM passes.
        cols = _choose_cols(n_main)
        y_head = _affine_pallas_2d(xf[:n_main].reshape(-1, cols), scale_arr,
                                   offset_arr, compute_dtype, donate).reshape(-1)
        tail = xf[n_main:]
        y_tail = (tail.astype(jnp.float32) * scale_arr[0] + offset_arr[0]).astype(dtype)
        y = jnp.concatenate([y_head, y_tail])

    return y.reshape(orig_shape)


# ---------------------------------------------------------------------------
# JAX re-implementation of AbstractTransform / BaseTransform plumbing
# ---------------------------------------------------------------------------
class _ConstantSampler:
    """Deterministic stand-in for rising's DiscreteParameter([...])."""

    def __init__(self, value):
        self._value = value

    def __call__(self, *args, **kwargs):
        return self._value


class AbstractTransform:
    """Base class for all transforms (JAX version; no autograd context needed)."""

    def __init__(self, grad: bool = False, **kwargs):
        self.grad = grad
        self._registered_samplers = []
        for key, item in kwargs.items():
            setattr(self, key, item)

    def register_sampler(self, name: str, sampler, *args, **kwargs):
        self._registered_samplers.append(name)
        if name in self.__dict__:
            raise NameError("Name %s already exists" % name)
        if not isinstance(sampler, (tuple, list)):
            sampler = [sampler]
        new_sampler = []
        for _s in sampler:
            if not callable(_s):
                _s = _ConstantSampler(_s)
            new_sampler.append(_s)
        sampler = new_sampler

        def sample():
            result = tuple(_s(*args, **kwargs) for _s in sampler)
            if len(result) == 1:
                return result[0]
            return result

        self.__dict__["_sampler_" + name] = sample

    def get_property(self, name: str):
        return self.__dict__["_sampler_" + name]()

    def __call__(self, *args, **kwargs) -> Any:
        # TODO(synk): torch.enable_grad()/no_grad() context toggling has no
        # JAX/Pallas equivalent (grads are explicit transformations in JAX).
        return self.forward(*args, **kwargs)

    def forward(self, **data) -> dict:
        raise NotImplementedError


class BaseTransform(AbstractTransform):
    """Apply a functional interface (here: Pallas affine kernel) to given keys."""

    def __init__(
        self,
        augment_fn: Callable[..., Any],
        *args,
        keys: Sequence[str] = ("data",),
        grad: bool = False,
        property_names: Sequence[str] = (),
        **kwargs,
    ):
        sampler_vals = [kwargs.pop(name) for name in property_names]
        super().__init__(grad=grad, **kwargs)
        self.augment_fn = augment_fn
        self.keys = keys
        self.property_names = property_names
        self.args = args
        self.kwargs = kwargs
        for name, val in zip(property_names, sampler_vals):
            self.register_sampler(name, val)

    def forward(self, **data) -> Dict[str, Any]:
        kwargs = {}
        for k in self.property_names:
            kwargs[k] = self.get_property(k)
        kwargs.update(self.kwargs)
        for _key in self.keys:
            data[_key] = self.augment_fn(data[_key], *self.args, **kwargs)
        return data


# ---------------------------------------------------------------------------
# Demo
# ---------------------------------------------------------------------------
if __name__ == "__main__":
    key = jax.random.PRNGKey(0)
    k1, k2 = jax.random.split(key)

    # NCHW inputs, small shapes; one f32 key and one bf16 key to exercise the
    # native-dtype DMA + dtype-dispatched compute path.
    x = jax.random.normal(k1, (2, 4, 16, 16), dtype=jnp.float32)
    y = jax.random.normal(k2, (2, 4, 16, 16), dtype=jnp.float32).astype(jnp.bfloat16)

    trafo = BaseTransform(
        affine_augment_fn,
        keys=("data", "label"),
        property_names=("scale", "offset"),
        scale=2.0,
        offset=0.5,
    )

    out = trafo(data=x, label=y)
    out_data = jax.block_until_ready(out["data"])
    out_label = jax.block_until_ready(out["label"])

    # Correctness check against plain-JAX reference
    ref_data = x * 2.0 + 0.5
    ref_label = (y.astype(jnp.float32) * 2.0 + 0.5).astype(jnp.bfloat16)

    assert out_data.shape == x.shape and out_data.dtype == x.dtype
    assert out_label.shape == y.shape and out_label.dtype == y.dtype
    assert jnp.allclose(out_data, ref_data, atol=1e-6)
    # bf16 tolerance covers both compute modes (bf16 VALU on v6e/v7x, f32 on v5e)
    assert jnp.allclose(out_label.astype(jnp.float32),
                        ref_label.astype(jnp.float32), atol=1e-1)

    print("KERNEL_OK")
</pallas_src>

<mosaic_0001>
module attributes {stable_mosaic.version = 11 : i64} {
  func.func @_affine_kernel(%arg0: i32, %arg1: memref<1xf32, #tpu.memory_space<smem>>, %arg2: memref<1xf32, #tpu.memory_space<smem>>, %arg3: memref<8x256xf32, #tpu.memory_space<vmem>>, %arg4: memref<8x256xf32, #tpu.memory_space<vmem>>) attributes {dimension_semantics = [#tpu.dimension_semantics<parallel>], iteration_bounds = array<i64: 1>, scalar_prefetch = 0 : i64, scratch_operands = 0 : i64, tpu.core_type = #tpu.core_type<tc>, window_params = [{transform_indices = @transform_0, window_bounds = array<i64: 1>}, {transform_indices = @transform_1, window_bounds = array<i64: 1>}, {transform_indices = @transform_2, window_bounds = array<i64: 8, 256>}, {transform_indices = @transform_3, window_bounds = array<i64: 8, 256>}]} {
    %c0 = arith.constant 0 : index
    %0 = memref.load %arg1[%c0] : memref<1xf32, #tpu.memory_space<smem>>
    %c0_0 = arith.constant 0 : index
    %1 = memref.load %arg2[%c0_0] : memref<1xf32, #tpu.memory_space<smem>>
    %c0_1 = arith.constant 0 : index
    %c0_2 = arith.constant 0 : index
    %2 = vector.load %arg3[%c0_1, %c0_2] : memref<8x256xf32, #tpu.memory_space<vmem>>, vector<8x256xf32>
    %3 = vector.broadcast %0 : f32 to vector<8x256xf32>
    %4 = arith.mulf %2, %3 : vector<8x256xf32>
    %5 = vector.broadcast %1 : f32 to vector<8x256xf32>
    %6 = arith.addf %4, %5 : vector<8x256xf32>
    %c0_3 = arith.constant 0 : index
    %c0_4 = arith.constant 0 : index
    %7 = vector.load %arg4[%c0_3, %c0_4] : memref<8x256xf32, #tpu.memory_space<vmem>>, vector<8x256xf32>
    tpu.vector_store %arg4[%c0_3, %c0_4], %6 {strides = array<i32>} : memref<8x256xf32, #tpu.memory_space<vmem>>, vector<8x256xf32>,
    return
  }
  func.func @transform_0(%arg0: i32) -> i32 {
    %c0_i32 = arith.constant 0 : i32
    %c0_i32_0 = arith.constant 0 : i32
    return %c0_i32 : i32
  }
  func.func @transform_1(%arg0: i32) -> i32 {
    %c0_i32 = arith.constant 0 : i32
    %c0_i32_0 = arith.constant 0 : i32
    return %c0_i32 : i32
  }
  func.func @transform_2(%arg0: i32) -> (i32, i32) {
    %c0_i32 = arith.constant 0 : i32
    %c0_i32_0 = arith.constant 0 : i32
    return %arg0, %c0_i32 : i32, i32
  }
  func.func @transform_3(%arg0: i32) -> (i32, i32) {
    %c0_i32 = arith.constant 0 : i32
    %c0_i32_0 = arith.constant 0 : i32
    return %arg0, %c0_i32 : i32, i32
  }
}

</mosaic_0001>

<bundles_post_ra>
// kernel: tpu_custom_call.1
= control target key start
LH: loop header
LB: loop body
LE: loop exit
PB: predicated region body
PF: predicated region fallthrough
CT: control target
= control target key end

     0   :  { %10 = vsyncpa [#allocation5], 0  ;;  %s136_s0 = inlined_call_operand.<no memory space> [shape: f32[1], index: 0, kind: input, shape index: {}]   ;;  %s137_s1 = inlined_call_operand.<no memory space> [shape: f32[1], index: 1, kind: input, shape index: {}]   ;;  %s138_s2 = inlined_call_operand.hbm [shape: f32[8,256], index: 2, kind: input, shape index: {}]   ;;  %s139_s3 = inlined_call_operand.hbm [shape: f32[8,256], index: 3, kind: output, shape index: {}]  }
   0x1   :  { %11 = vsyncpa [#allocation6], 0  ;;  %s102_s12 = smov [#allocation4]  }
   0x2   :  { %s22_s13 = sshll.u32 %s102_s12, 4  ;;  %s23_s13 = int_to_ptr.vmem [resolvable:$true] %s22_s13 }
   0x3   :  { %s66_s14 = scalar_lea.vmem %s23_s13, 256  ;;  %p71_p1 = scmp.lt.s32.totalorder %s23_s13, %s23_s13 }
   0x4   :  { %p67_p0 = scmp.ne.s32.totalorder %s23_s13, %s66_s14  ;;  %p72_p2 = scmp.lt.s32.totalorder %s66_s14, %s66_s14 }
   0x6   :  { %p73_p3 = por %p72_p2, %p71_p1 }
   0x8   :  { %p74_p4 = pnand %p73_p3, %p67_p0 }
   0xa   :  { %77 = shalt.err (!%p74_p4)
}
   0xb   :  { %25 = dma.hbm_to_vmem [thread:$0]  %s138_s2, 256, %s23_s13, [#allocation5]  }
   0xc   :  { %98 = dma.done.wait [#allocation5], 256  }
   0xd   :  { %99 = vsyncadd [#allocation5], 4294967040  ;;  %v33_v0 = vstv %s136_s0  ;;  %v31_v1 = vld [vmem:[#allocation4] sm:$0xff]  ;;  %v36_v2 = vstv %s137_s1  ;;  %v32_v3 = vld [vmem:[#allocation4 + $0x8] sm:$0xff]  ;;  %s103_s21 = smov [#allocation7]  }
   0xe   :  { %s47_s22 = sshll.u32 %s103_s21, 4  ;;  %v34_v4 = vmul.f32 %v33_v0, %v31_v1  ;;  %v35_v5 = vmul.f32 %v33_v0, %v32_v3  ;;  %s48_s22 = int_to_ptr.vmem [resolvable:$true] %s47_s22 }
   0xf   :  { %s78_s2 = scalar_lea.vmem %s48_s22, 256  ;;  %p83_p6 = scmp.lt.s32.totalorder %s48_s22, %s48_s22 }
  0x10   :  { %v37_v6 = vadd.f32 %v36_v2, %v34_v4  ;;  %v38_v7 = vadd.f32 %v36_v2, %v35_v5  ;;  %p79_p5 = scmp.ne.s32.totalorder %s48_s22, %s78_s2  ;;  %p84_p7 = scmp.lt.s32.totalorder %s78_s2, %s78_s2 }
  0x12   :  { %39 = vst [vmem:[#allocation7] sm:$0xff] %v37_v6  ;;  %40 = vst [vmem:[#allocation7 + $0x8] sm:$0xff] %v38_v7  ;;  %p85_p8 = por %p84_p7, %p83_p6 }
  0x14   :  { %p86_p9 = pnand %p85_p8, %p79_p5 }
  0x16   :  { %89 = shalt.err (!%p86_p9)
}
  0x17   :  { %50 = dma.vmem_to_hbm [thread:$0]  %s48_s22, 256, %s139_s3, [#allocation6]  }
  0x18   :  { %100 = dma.done.wait [#allocation6], 256  }
  0x19   :  { %101 = vsyncadd [#allocation6], 4294967040 }
  0x1a   :  { %54 = vsyncpa [#allocation5], 1 }
  0x1b   :  { %55 = vsyncpa [#allocation6], 1 }

</bundles_post_ra>
